<compile_context>
chip_gen: v7x
topology: tpu7x:2x2x1
jax: 0.10.0
libtpu: 0.0.40
codegen_flags: <defaults>
</compile_context>

<pallas_src>
import jax
import jax.numpy as jnp
from jax.experimental import pallas as pl
from jax.experimental.pallas import tpu as pltpu


# ----------------------------------------------------------------------------
# Fused Pallas kernel: the entire CombinedModel.forward for one (batch, row-tile)
# ----------------------------------------------------------------------------
def _fused_combined_kernel(x_ref,
                           w1_ref, b1_ref, wd_ref, bd_ref,
                           w2_ref, b2_ref, w3_ref, b3_ref,
                           w4_ref, w2e_ref, w0_ref, becp_ref,
                           p2_ref, p4_ref, u2_ref, u4_ref,
                           ecp_ref, ii_ref):
    f32 = jnp.float32
    x = x_ref[...]                                       # [Cin, T] channel-major tile
    w1 = w1_ref[...]
    b1 = b1_ref[...]

    # ---- efe pass 1 (only the live branch) + decoder + residual add ------------
    # input_images = x + decoder(relu(conv1(x))).  conv2/conv3/pools of pass 1 are
    # dead in CombinedModel.forward and are skipped on purpose.
    f1a = jnp.maximum(jnp.dot(w1, x, preferred_element_type=f32) + b1, 0.0)       # [8,  T]
    ii = x + jnp.dot(wd_ref[...], f1a, preferred_element_type=f32) + bd_ref[...]  # [4,  T]
    ii_ref[...] = ii.astype(ii_ref.dtype)

    # ---- efe pass 2: full pyramid on input_images -------------------------------
    f1 = jnp.maximum(jnp.dot(w1, ii, preferred_element_type=f32) + b1, 0.0)       # [8,  T]
    p2 = jnp.dot(f1, p2_ref[...], preferred_element_type=f32)                     # [8,  T/4 ]
    f2 = jnp.maximum(jnp.dot(w2_ref[...], p2, preferred_element_type=f32)
                     + b2_ref[...], 0.0)                                          # [16, T/4 ]
    p4 = jnp.dot(f2, p4_ref[...], preferred_element_type=f32)                     # [16, T/16]
    f4 = jnp.maximum(jnp.dot(w3_ref[...], p4, preferred_element_type=f32)
                     + b3_ref[...], 0.0)                                          # [32, T/16]

    # ---- ecp head: nearest upsample in-register + split 56-ch 1x1 conv (no concat)
    u4 = jnp.dot(f4, u4_ref[...], preferred_element_type=f32)                     # [32, T]
    u2 = jnp.dot(f2, u2_ref[...], preferred_element_type=f32)                     # [16, T]
    ecp = (jnp.dot(w4_ref[...], u4, preferred_element_type=f32)
           + jnp.dot(w2e_ref[...], u2, preferred_element_type=f32)
           + jnp.dot(w0_ref[...], f1, preferred_element_type=f32)
           + becp_ref[...])                                                       # [4,  T]
    ecp_ref[...] = ecp.astype(ecp_ref.dtype)


# ----------------------------------------------------------------------------
# Constant pooling / upsampling matrices (right-multiply a [C, H*W] feature map)
# ----------------------------------------------------------------------------
def _avgpool_matrix(H, W):
    """[H*W, (H//2)*(W//2)]: X[C, H*W] @ P == 2x2 stride-2 average pool."""
    n = jnp.arange(H * W)
    h, w = n // W, n % W
    m = (h // 2) * (W // 2) + (w // 2)
    return jax.nn.one_hot(m, (H // 2) * (W // 2), dtype=jnp.float32) * 0.25


def _upsample_matrix(Hs, Ws, factor):
    """[Hs*Ws, Hs*f*Ws*f]: X[C, Hs*Ws] @ U == nearest-neighbor upsample by `factor`."""
    Hf, Wf = Hs * factor, Ws * factor
    n = jnp.arange(Hf * Wf)
    h, w = n // Wf, n % Wf
    m = (h // factor) * Ws + (w // factor)
    return jax.nn.one_hot(m, Hs * Ws, dtype=jnp.float32).T


def _choose_rows_per_tile(H, W, max_tile_lanes=1024):
    """Largest rows-per-tile such that rows | H, rows % 4 == 0, the flattened tile is
    the whole image or a multiple of 128 lanes, and rows*W <= max_tile_lanes (the cap
    bounds the O(T^2) pool/upsample matrices kept resident in VMEM)."""
    best = None
    for rows in range(4, H + 1, 4):
        if H % rows:
            continue
        t = rows * W
        if rows != H and t % 128:
            continue
        if t <= max_tile_lanes:
            best = rows
    if best is None:
        best = H          # whole image per tile: block == full dim is always legal
    return best


# ----------------------------------------------------------------------------
# Parameters (synthetic, deterministic, stored channel-major: W[Cout, Cin], b[Cout, 1])
# ----------------------------------------------------------------------------
def init_params(key, C_in=4):
    c1, c2, c3 = 8, 16, 32
    ks = jax.random.split(key, 5)

    def w(k, cout, cin):
        return jax.random.normal(k, (cout, cin), jnp.float32) / jnp.sqrt(float(cin))

    def b(c):
        return jnp.zeros((c, 1), jnp.float32)

    ecp_w = w(ks[4], C_in, c3 + c2 + c1)          # full 56->4 conv weight
    return {
        "efe_w1": w(ks[0], c1, C_in), "efe_b1": b(c1),
        "efe_w2": w(ks[1], c2, c1),   "efe_b2": b(c2),
        "efe_w3": w(ks[2], c3, c2),   "efe_b3": b(c3),
        "dec_w":  w(ks[3], C_in, c1), "dec_b":  b(C_in),
        # split so the 56-channel concat never materializes in the kernel:
        "ecp_w4": ecp_w[:, :c3],                  # [4, 32] acts on upsampled f4
        "ecp_w2": ecp_w[:, c3:c3 + c2],           # [4, 16] acts on upsampled f2
        "ecp_w0": ecp_w[:, c3 + c2:],             # [4,  8] acts on f1
        "ecp_b":  b(C_in),
    }


# ----------------------------------------------------------------------------
# CombinedModel.forward
# ----------------------------------------------------------------------------
def combined_forward(x_nchw, params):
    B, C, H, W = x_nchw.shape
    if H % 4 or W % 4:
        raise ValueError("H and W must be multiples of 4 (two 2x2 avg-pools + x4 upsample).")

    rows = _choose_rows_per_tile(H, W)
    T = rows * W
    n_tiles = H // rows
    x_flat = x_nchw.reshape(B, C, H * W)          # NCHW is already channel-major: free reshape

    p2 = _avgpool_matrix(rows, W)                 # [T,     T//4 ]
    p4 = _avgpool_matrix(rows // 2, W // 2)       # [T//4,  T//16]
    u2 = _upsample_matrix(rows // 2, W // 2, 2)   # [T//4,  T    ]
    u4 = _upsample_matrix(rows // 4, W // 4, 4)   # [T//16, T    ]

    consts = (params["efe_w1"], params["efe_b1"], params["dec_w"], params["dec_b"],
              params["efe_w2"], params["efe_b2"], params["efe_w3"], params["efe_b3"],
              params["ecp_w4"], params["ecp_w2"], params["ecp_w0"], params["ecp_b"],
              p2, p4, u2, u4)

    img_spec = pl.BlockSpec((None, C, T), lambda b, t: (b, 0, t))
    const_specs = [pl.BlockSpec(a.shape, lambda b, t: (0, 0)) for a in consts]

    ecp_flat, ii_flat = pl.pallas_call(
        _fused_combined_kernel,
        out_shape=(jax.ShapeDtypeStruct((B, C, H * W), jnp.float32),
                   jax.ShapeDtypeStruct((B, C, H * W), jnp.float32)),
        grid=(B, n_tiles),
        in_specs=[img_spec] + const_specs,
        out_specs=(img_spec, img_spec),
        compiler_params=pltpu.CompilerParams(
            dimension_semantics=("parallel", "parallel")),
    )(x_flat, *consts)

    return ecp_flat.reshape(B, C, H, W), ii_flat.reshape(B, C, H, W)


# ----------------------------------------------------------------------------
# Plain-JAX reference (different code path for pooling/upsampling) for a sanity check
# ----------------------------------------------------------------------------
def _conv1x1_ref(x, w, b, relu):
    y = jnp.einsum("oc,bchw->bohw", w, x) + b.reshape(1, -1, 1, 1)
    return jnp.maximum(y, 0.0) if relu else y


def _avgpool2_ref(x):
    B, C, H, W = x.shape
    return x.reshape(B, C, H // 2, 2, W // 2, 2).mean(axis=(3, 5))


def _upsample_ref(x, f):
    return jnp.repeat(jnp.repeat(x, f, axis=2), f, axis=3)


def reference_forward(x, p):
    def efe(z):
        f1 = _conv1x1_ref(z, p["efe_w1"], p["efe_b1"], True)
        f2 = _conv1x1_ref(_avgpool2_ref(f1), p["efe_w2"], p["efe_b2"], True)
        f4 = _conv1x1_ref(_avgpool2_ref(f2), p["efe_w3"], p["efe_b3"], True)
        return f4, f2, f1

    _, _, out = efe(x)
    dec = _conv1x1_ref(out, p["dec_w"], p["dec_b"], False)
    ii = x + dec
    f4, f2, f1 = efe(ii)
    cat = jnp.concatenate([_upsample_ref(f4, 4), _upsample_ref(f2, 2), f1], axis=1)
    w_cat = jnp.concatenate([p["ecp_w4"], p["ecp_w2"], p["ecp_w0"]], axis=1)
    ecp = _conv1x1_ref(cat, w_cat, p["ecp_b"], False)
    return ecp, ii


if __name__ == "__main__":
    key = jax.random.PRNGKey(0)
    k_x, k_p = jax.random.split(key)

    B, C, H, W = 2, 4, 16, 16
    x = jax.random.normal(k_x, (B, C, H, W), jnp.float32)   # NCHW, PyTorch convention
    params = init_params(k_p, C_in=C)

    ecp_output, input_images = jax.jit(combined_forward)(x, params)
    jax.block_until_ready((ecp_output, input_images))

    assert ecp_output.shape == (B, C, H, W)
    assert input_images.shape == (B, C, H, W)

    # cross-check the fused kernel against the plain-JAX reference
    ecp_want, ii_want = jax.jit(reference_forward)(x, params)
    assert bool(jnp.allclose(input_images, ii_want, atol=5e-2, rtol=5e-2)), "input_images mismatch"
    assert bool(jnp.allclose(ecp_output, ecp_want, atol=5e-2, rtol=5e-2)), "ecp_output mismatch"

    print("KERNEL_OK")
</pallas_src>

<mosaic_0001>
module attributes {stable_mosaic.version = 11 : i64} {
  func.func @_fused_combined_kernel(%arg0: i32, %arg1: i32, %arg2: memref<1x4x256xf32, #tpu.memory_space<vmem>>, %arg3: memref<8x4xf32, #tpu.memory_space<vmem>>, %arg4: memref<8x1xf32, #tpu.memory_space<vmem>>, %arg5: memref<4x8xf32, #tpu.memory_space<vmem>>, %arg6: memref<4x1xf32, #tpu.memory_space<vmem>>, %arg7: memref<16x8xf32, #tpu.memory_space<vmem>>, %arg8: memref<16x1xf32, #tpu.memory_space<vmem>>, %arg9: memref<32x16xf32, #tpu.memory_space<vmem>>, %arg10: memref<32x1xf32, #tpu.memory_space<vmem>>, %arg11: memref<4x32xf32, #tpu.memory_space<vmem>>, %arg12: memref<4x16xf32, #tpu.memory_space<vmem>>, %arg13: memref<4x8xf32, #tpu.memory_space<vmem>>, %arg14: memref<4x1xf32, #tpu.memory_space<vmem>>, %arg15: memref<256x64xf32, #tpu.memory_space<vmem>>, %arg16: memref<64x16xf32, #tpu.memory_space<vmem>>, %arg17: memref<64x256xf32, #tpu.memory_space<vmem>>, %arg18: memref<16x256xf32, #tpu.memory_space<vmem>>, %arg19: memref<1x4x256xf32, #tpu.memory_space<vmem>>, %arg20: memref<1x4x256xf32, #tpu.memory_space<vmem>>) attributes {dimension_semantics = [#tpu.dimension_semantics<parallel>, #tpu.dimension_semantics<parallel>], iteration_bounds = array<i64: 2, 1>, scalar_prefetch = 0 : i64, scratch_operands = 0 : i64, tpu.core_type = #tpu.core_type<tc>, window_params = [{transform_indices = @transform_0, window_bounds = array<i64: 1, 4, 256>}, {pipeline_mode = #tpu.pipeline_mode<synchronous>, transform_indices = @transform_1, window_bounds = array<i64: 8, 4>}, {pipeline_mode = #tpu.pipeline_mode<synchronous>, transform_indices = @transform_2, window_bounds = array<i64: 8, 1>}, {pipeline_mode = #tpu.pipeline_mode<synchronous>, transform_indices = @transform_3, window_bounds = array<i64: 4, 8>}, {pipeline_mode = #tpu.pipeline_mode<synchronous>, transform_indices = @transform_4, window_bounds = array<i64: 4, 1>}, {pipeline_mode = #tpu.pipeline_mode<synchronous>, transform_indices = @transform_5, window_bounds = array<i64: 16, 8>}, {pipeline_mode = #tpu.pipeline_mode<synchronous>, transform_indices = @transform_6, window_bounds = array<i64: 16, 1>}, {pipeline_mode = #tpu.pipeline_mode<synchronous>, transform_indices = @transform_7, window_bounds = array<i64: 32, 16>}, {pipeline_mode = #tpu.pipeline_mode<synchronous>, transform_indices = @transform_8, window_bounds = array<i64: 32, 1>}, {pipeline_mode = #tpu.pipeline_mode<synchronous>, transform_indices = @transform_9, window_bounds = array<i64: 4, 32>}, {pipeline_mode = #tpu.pipeline_mode<synchronous>, transform_indices = @transform_10, window_bounds = array<i64: 4, 16>}, {pipeline_mode = #tpu.pipeline_mode<synchronous>, transform_indices = @transform_11, window_bounds = array<i64: 4, 8>}, {pipeline_mode = #tpu.pipeline_mode<synchronous>, transform_indices = @transform_12, window_bounds = array<i64: 4, 1>}, {pipeline_mode = #tpu.pipeline_mode<synchronous>, transform_indices = @transform_13, window_bounds = array<i64: 256, 64>}, {pipeline_mode = #tpu.pipeline_mode<synchronous>, transform_indices = @transform_14, window_bounds = array<i64: 64, 16>}, {pipeline_mode = #tpu.pipeline_mode<synchronous>, transform_indices = @transform_15, window_bounds = array<i64: 64, 256>}, {pipeline_mode = #tpu.pipeline_mode<synchronous>, transform_indices = @transform_16, window_bounds = array<i64: 16, 256>}, {transform_indices = @transform_17, window_bounds = array<i64: 1, 4, 256>}, {transform_indices = @transform_18, window_bounds = array<i64: 1, 4, 256>}]} {
    %c0 = arith.constant 0 : index
    %c0_0 = arith.constant 0 : index
    %c0_1 = arith.constant 0 : index
    %0 = vector.load %arg2[%c0, %c0_0, %c0_1] : memref<1x4x256xf32, #tpu.memory_space<vmem>>, vector<1x4x256xf32>
    %1 = vector.shape_cast %0 : vector<1x4x256xf32> to vector<4x256xf32>
    %c0_2 = arith.constant 0 : index
    %c0_3 = arith.constant 0 : index
    %2 = vector.load %arg3[%c0_2, %c0_3] : memref<8x4xf32, #tpu.memory_space<vmem>>, vector<8x4xf32>
    %c0_4 = arith.constant 0 : index
    %c0_5 = arith.constant 0 : index
    %3 = vector.load %arg4[%c0_4, %c0_5] : memref<8x1xf32, #tpu.memory_space<vmem>>, vector<8x1xf32>
    %cst = arith.constant dense<0.000000e+00> : vector<8x256xf32>
    %4 = tpu.matmul %2, %1, %cst {dimension_numbers = #tpu.dot_dimension_numbers<[1], [0], [0], [1], [0, 0, 1, 1], [], []>} : vector<8x4xf32>, vector<4x256xf32>, vector<8x256xf32> -> vector<8x256xf32>
    %5 = vector.broadcast %3 : vector<8x1xf32> to vector<8x256xf32>
    %6 = arith.addf %4, %5 : vector<8x256xf32>
    %cst_6 = arith.constant 0.000000e+00 : f32
    %7 = vector.broadcast %cst_6 : f32 to vector<8x256xf32>
    %8 = arith.maximumf %6, %7 : vector<8x256xf32>
    %c0_7 = arith.constant 0 : index
    %c0_8 = arith.constant 0 : index
    %9 = vector.load %arg5[%c0_7, %c0_8] : memref<4x8xf32, #tpu.memory_space<vmem>>, vector<4x8xf32>
    %cst_9 = arith.constant dense<0.000000e+00> : vector<4x256xf32>
    %10 = tpu.matmul %9, %8, %cst_9 {dimension_numbers = #tpu.dot_dimension_numbers<[1], [0], [0], [1], [0, 0, 1, 1], [], []>} : vector<4x8xf32>, vector<8x256xf32>, vector<4x256xf32> -> vector<4x256xf32>
    %11 = arith.addf %1, %10 : vector<4x256xf32>
    %c0_10 = arith.constant 0 : index
    %c0_11 = arith.constant 0 : index
    %12 = vector.load %arg6[%c0_10, %c0_11] : memref<4x1xf32, #tpu.memory_space<vmem>>, vector<4x1xf32>
    %13 = vector.broadcast %12 : vector<4x1xf32> to vector<4x256xf32>
    %14 = arith.addf %11, %13 : vector<4x256xf32>
    %c0_12 = arith.constant 0 : index
    %c0_13 = arith.constant 0 : index
    %c0_14 = arith.constant 0 : index
    %15 = vector.load %arg20[%c0_12, %c0_13, %c0_14] : memref<1x4x256xf32, #tpu.memory_space<vmem>>, vector<1x4x256xf32>
    %16 = vector.shape_cast %15 : vector<1x4x256xf32> to vector<4x256xf32>
    %17 = vector.shape_cast %14 : vector<4x256xf32> to vector<1x4x256xf32>
    tpu.vector_store %arg20[%c0_12, %c0_13, %c0_14], %17 {strides = array<i32>} : memref<1x4x256xf32, #tpu.memory_space<vmem>>, vector<1x4x256xf32>,
    %cst_15 = arith.constant dense<0.000000e+00> : vector<8x256xf32>
    %18 = tpu.matmul %2, %14, %cst_15 {dimension_numbers = #tpu.dot_dimension_numbers<[1], [0], [0], [1], [0, 0, 1, 1], [], []>} : vector<8x4xf32>, vector<4x256xf32>, vector<8x256xf32> -> vector<8x256xf32>
    %19 = vector.broadcast %3 : vector<8x1xf32> to vector<8x256xf32>
    %20 = arith.addf %18, %19 : vector<8x256xf32>
    %cst_16 = arith.constant 0.000000e+00 : f32
    %21 = vector.broadcast %cst_16 : f32 to vector<8x256xf32>
    %22 = arith.maximumf %20, %21 : vector<8x256xf32>
    %c0_17 = arith.constant 0 : index
    %c0_18 = arith.constant 0 : index
    %23 = vector.load %arg15[%c0_17, %c0_18] : memref<256x64xf32, #tpu.memory_space<vmem>>, vector<256x64xf32>
    %cst_19 = arith.constant dense<0.000000e+00> : vector<8x64xf32>
    %24 = tpu.matmul %22, %23, %cst_19 {dimension_numbers = #tpu.dot_dimension_numbers<[1], [0], [0], [1], [0, 0, 1, 1], [], []>} : vector<8x256xf32>, vector<256x64xf32>, vector<8x64xf32> -> vector<8x64xf32>
    %c0_20 = arith.constant 0 : index
    %c0_21 = arith.constant 0 : index
    %25 = vector.load %arg7[%c0_20, %c0_21] : memref<16x8xf32, #tpu.memory_space<vmem>>, vector<16x8xf32>
    %cst_22 = arith.constant dense<0.000000e+00> : vector<16x64xf32>
    %26 = tpu.matmul %25, %24, %cst_22 {dimension_numbers = #tpu.dot_dimension_numbers<[1], [0], [0], [1], [0, 0, 1, 1], [], []>} : vector<16x8xf32>, vector<8x64xf32>, vector<16x64xf32> -> vector<16x64xf32>
    %c0_23 = arith.constant 0 : index
    %c0_24 = arith.constant 0 : index
    %27 = vector.load %arg8[%c0_23, %c0_24] : memref<16x1xf32, #tpu.memory_space<vmem>>, vector<16x1xf32>
    %28 = vector.broadcast %27 : vector<16x1xf32> to vector<16x64xf32>
    %29 = arith.addf %26, %28 : vector<16x64xf32>
    %cst_25 = arith.constant 0.000000e+00 : f32
    %30 = vector.broadcast %cst_25 : f32 to vector<16x64xf32>
    %31 = arith.maximumf %29, %30 : vector<16x64xf32>
    %c0_26 = arith.constant 0 : index
    %c0_27 = arith.constant 0 : index
    %32 = vector.load %arg16[%c0_26, %c0_27] : memref<64x16xf32, #tpu.memory_space<vmem>>, vector<64x16xf32>
    %cst_28 = arith.constant dense<0.000000e+00> : vector<16x16xf32>
    %33 = tpu.matmul %31, %32, %cst_28 {dimension_numbers = #tpu.dot_dimension_numbers<[1], [0], [0], [1], [0, 0, 1, 1], [], []>} : vector<16x64xf32>, vector<64x16xf32>, vector<16x16xf32> -> vector<16x16xf32>
    %c0_29 = arith.constant 0 : index
    %c0_30 = arith.constant 0 : index
    %34 = vector.load %arg9[%c0_29, %c0_30] : memref<32x16xf32, #tpu.memory_space<vmem>>, vector<32x16xf32>
    %cst_31 = arith.constant dense<0.000000e+00> : vector<32x16xf32>
    %35 = tpu.matmul %34, %33, %cst_31 {dimension_numbers = #tpu.dot_dimension_numbers<[1], [0], [0], [1], [0, 0, 1, 1], [], []>} : vector<32x16xf32>, vector<16x16xf32>, vector<32x16xf32> -> vector<32x16xf32>
    %c0_32 = arith.constant 0 : index
    %c0_33 = arith.constant 0 : index
    %36 = vector.load %arg10[%c0_32, %c0_33] : memref<32x1xf32, #tpu.memory_space<vmem>>, vector<32x1xf32>
    %37 = vector.broadcast %36 : vector<32x1xf32> to vector<32x16xf32>
    %38 = arith.addf %35, %37 : vector<32x16xf32>
    %cst_34 = arith.constant 0.000000e+00 : f32
    %39 = vector.broadcast %cst_34 : f32 to vector<32x16xf32>
    %40 = arith.maximumf %38, %39 : vector<32x16xf32>
    %c0_35 = arith.constant 0 : index
    %c0_36 = arith.constant 0 : index
    %41 = vector.load %arg18[%c0_35, %c0_36] : memref<16x256xf32, #tpu.memory_space<vmem>>, vector<16x256xf32>
    %cst_37 = arith.constant dense<0.000000e+00> : vector<32x256xf32>
    %42 = tpu.matmul %40, %41, %cst_37 {dimension_numbers = #tpu.dot_dimension_numbers<[1], [0], [0], [1], [0, 0, 1, 1], [], []>} : vector<32x16xf32>, vector<16x256xf32>, vector<32x256xf32> -> vector<32x256xf32>
    %c0_38 = arith.constant 0 : index
    %c0_39 = arith.constant 0 : index
    %43 = vector.load %arg17[%c0_38, %c0_39] : memref<64x256xf32, #tpu.memory_space<vmem>>, vector<64x256xf32>
    %cst_40 = arith.constant dense<0.000000e+00> : vector<16x256xf32>
    %44 = tpu.matmul %31, %43, %cst_40 {dimension_numbers = #tpu.dot_dimension_numbers<[1], [0], [0], [1], [0, 0, 1, 1], [], []>} : vector<16x64xf32>, vector<64x256xf32>, vector<16x256xf32> -> vector<16x256xf32>
    %c0_41 = arith.constant 0 : index
    %c0_42 = arith.constant 0 : index
    %45 = vector.load %arg11[%c0_41, %c0_42] : memref<4x32xf32, #tpu.memory_space<vmem>>, vector<4x32xf32>
    %cst_43 = arith.constant dense<0.000000e+00> : vector<4x256xf32>
    %46 = tpu.matmul %45, %42, %cst_43 {dimension_numbers = #tpu.dot_dimension_numbers<[1], [0], [0], [1], [0, 0, 1, 1], [], []>} : vector<4x32xf32>, vector<32x256xf32>, vector<4x256xf32> -> vector<4x256xf32>
    %c0_44 = arith.constant 0 : index
    %c0_45 = arith.constant 0 : index
    %47 = vector.load %arg12[%c0_44, %c0_45] : memref<4x16xf32, #tpu.memory_space<vmem>>, vector<4x16xf32>
    %cst_46 = arith.constant dense<0.000000e+00> : vector<4x256xf32>
    %48 = tpu.matmul %47, %44, %cst_46 {dimension_numbers = #tpu.dot_dimension_numbers<[1], [0], [0], [1], [0, 0, 1, 1], [], []>} : vector<4x16xf32>, vector<16x256xf32>, vector<4x256xf32> -> vector<4x256xf32>
    %49 = arith.addf %46, %48 : vector<4x256xf32>
    %c0_47 = arith.constant 0 : index
    %c0_48 = arith.constant 0 : index
    %50 = vector.load %arg13[%c0_47, %c0_48] : memref<4x8xf32, #tpu.memory_space<vmem>>, vector<4x8xf32>
    %cst_49 = arith.constant dense<0.000000e+00> : vector<4x256xf32>
    %51 = tpu.matmul %50, %22, %cst_49 {dimension_numbers = #tpu.dot_dimension_numbers<[1], [0], [0], [1], [0, 0, 1, 1], [], []>} : vector<4x8xf32>, vector<8x256xf32>, vector<4x256xf32> -> vector<4x256xf32>
    %52 = arith.addf %49, %51 : vector<4x256xf32>
    %c0_50 = arith.constant 0 : index
    %c0_51 = arith.constant 0 : index
    %53 = vector.load %arg14[%c0_50, %c0_51] : memref<4x1xf32, #tpu.memory_space<vmem>>, vector<4x1xf32>
    %54 = vector.broadcast %53 : vector<4x1xf32> to vector<4x256xf32>
    %55 = arith.addf %52, %54 : vector<4x256xf32>
    %c0_52 = arith.constant 0 : index
    %c0_53 = arith.constant 0 : index
    %c0_54 = arith.constant 0 : index
    %56 = vector.load %arg19[%c0_52, %c0_53, %c0_54] : memref<1x4x256xf32, #tpu.memory_space<vmem>>, vector<1x4x256xf32>
    %57 = vector.shape_cast %56 : vector<1x4x256xf32> to vector<4x256xf32>
    %58 = vector.shape_cast %55 : vector<4x256xf32> to vector<1x4x256xf32>
    tpu.vector_store %arg19[%c0_52, %c0_53, %c0_54], %58 {strides = array<i32>} : memref<1x4x256xf32, #tpu.memory_space<vmem>>, vector<1x4x256xf32>,
    return
  }
  func.func @transform_0(%arg0: i32, %arg1: i32) -> (i32, i32, i32) {
    %c0_i32 = arith.constant 0 : i32
    %c0_i32_0 = arith.constant 0 : i32
    return %arg0, %c0_i32, %arg1 : i32, i32, i32
  }
  func.func @transform_1(%arg0: i32, %arg1: i32) -> (i32, i32) {
    %c0_i32 = arith.constant 0 : i32
    %c0_i32_0 = arith.constant 0 : i32
    %c0_i32_1 = arith.constant 0 : i32
    return %c0_i32, %c0_i32_0 : i32, i32
  }
  func.func @transform_2(%arg0: i32, %arg1: i32) -> (i32, i32) {
    %c0_i32 = arith.constant 0 : i32
    %c0_i32_0 = arith.constant 0 : i32
    %c0_i32_1 = arith.constant 0 : i32
    return %c0_i32, %c0_i32_0 : i32, i32
  }
  func.func @transform_3(%arg0: i32, %arg1: i32) -> (i32, i32) {
    %c0_i32 = arith.constant 0 : i32
    %c0_i32_0 = arith.constant 0 : i32
    %c0_i32_1 = arith.constant 0 : i32
    return %c0_i32, %c0_i32_0 : i32, i32
  }
  func.func @transform_4(%arg0: i32, %arg1: i32) -> (i32, i32) {
    %c0_i32 = arith.constant 0 : i32
    %c0_i32_0 = arith.constant 0 : i32
    %c0_i32_1 = arith.constant 0 : i32
    return %c0_i32, %c0_i32_0 : i32, i32
  }
  func.func @transform_5(%arg0: i32, %arg1: i32) -> (i32, i32) {
    %c0_i32 = arith.constant 0 : i32
    %c0_i32_0 = arith.constant 0 : i32
    %c0_i32_1 = arith.constant 0 : i32
    return %c0_i32, %c0_i32_0 : i32, i32
  }
  func.func @transform_6(%arg0: i32, %arg1: i32) -> (i32, i32) {
    %c0_i32 = arith.constant 0 : i32
    %c0_i32_0 = arith.constant 0 : i32
    %c0_i32_1 = arith.constant 0 : i32
    return %c0_i32, %c0_i32_0 : i32, i32
  }
  func.func @transform_7(%arg0: i32, %arg1: i32) -> (i32, i32) {
    %c0_i32 = arith.constant 0 : i32
    %c0_i32_0 = arith.constant 0 : i32
    %c0_i32_1 = arith.constant 0 : i32
    return %c0_i32, %c0_i32_0 : i32, i32
  }
  func.func @transform_8(%arg0: i32, %arg1: i32) -> (i32, i32) {
    %c0_i32 = arith.constant 0 : i32
    %c0_i32_0 = arith.constant 0 : i32
    %c0_i32_1 = arith.constant 0 : i32
    return %c0_i32, %c0_i32_0 : i32, i32
  }
  func.func @transform_9(%arg0: i32, %arg1: i32) -> (i32, i32) {
    %c0_i32 = arith.constant 0 : i32
    %c0_i32_0 = arith.constant 0 : i32
    %c0_i32_1 = arith.constant 0 : i32
    return %c0_i32, %c0_i32_0 : i32, i32
  }
  func.func @transform_10(%arg0: i32, %arg1: i32) -> (i32, i32) {
    %c0_i32 = arith.constant 0 : i32
    %c0_i32_0 = arith.constant 0 : i32
    %c0_i32_1 = arith.constant 0 : i32
    return %c0_i32, %c0_i32_0 : i32, i32
  }
  func.func @transform_11(%arg0: i32, %arg1: i32) -> (i32, i32) {
    %c0_i32 = arith.constant 0 : i32
    %c0_i32_0 = arith.constant 0 : i32
    %c0_i32_1 = arith.constant 0 : i32
    return %c0_i32, %c0_i32_0 : i32, i32
  }
  func.func @transform_12(%arg0: i32, %arg1: i32) -> (i32, i32) {
    %c0_i32 = arith.constant 0 : i32
    %c0_i32_0 = arith.constant 0 : i32
    %c0_i32_1 = arith.constant 0 : i32
    return %c0_i32, %c0_i32_0 : i32, i32
  }
  func.func @transform_13(%arg0: i32, %arg1: i32) -> (i32, i32) {
    %c0_i32 = arith.constant 0 : i32
    %c0_i32_0 = arith.constant 0 : i32
    %c0_i32_1 = arith.constant 0 : i32
    return %c0_i32, %c0_i32_0 : i32, i32
  }
  func.func @transform_14(%arg0: i32, %arg1: i32) -> (i32, i32) {
    %c0_i32 = arith.constant 0 : i32
    %c0_i32_0 = arith.constant 0 : i32
    %c0_i32_1 = arith.constant 0 : i32
    return %c0_i32, %c0_i32_0 : i32, i32
  }
  func.func @transform_15(%arg0: i32, %arg1: i32) -> (i32, i32) {
    %c0_i32 = arith.constant 0 : i32
    %c0_i32_0 = arith.constant 0 : i32
    %c0_i32_1 = arith.constant 0 : i32
    return %c0_i32, %c0_i32_0 : i32, i32
  }
  func.func @transform_16(%arg0: i32, %arg1: i32) -> (i32, i32) {
    %c0_i32 = arith.constant 0 : i32
    %c0_i32_0 = arith.constant 0 : i32
    %c0_i32_1 = arith.constant 0 : i32
    return %c0_i32, %c0_i32_0 : i32, i32
  }
  func.func @transform_17(%arg0: i32, %arg1: i32) -> (i32, i32, i32) {
    %c0_i32 = arith.constant 0 : i32
    %c0_i32_0 = arith.constant 0 : i32
    return %arg0, %c0_i32, %arg1 : i32, i32, i32
  }
  func.func @transform_18(%arg0: i32, %arg1: i32) -> (i32, i32, i32) {
    %c0_i32 = arith.constant 0 : i32
    %c0_i32_0 = arith.constant 0 : i32
    return %arg0, %c0_i32, %arg1 : i32, i32, i32
  }
}

</mosaic_0001>

<bundles_post_ra>
// kernel: combined_forward.1
= control target key start
LH: loop header
LB: loop body
LE: loop exit
PB: predicated region body
PF: predicated region fallthrough
CT: control target
= control target key end

     0   :  { %s2269_s27 = smov 0   ;;  %s2271_s28 = smov 0   ;;  %s2615_s0 = inlined_call_operand.vmem [shape: f32[2,4,256], index: 0, kind: input, shape index: {}]   ;;  %s2616_s1 = inlined_call_operand.vmem [shape: f32[8,4], index: 1, kind: input, shape index: {}]   ;;  %s2617_s2 = inlined_call_operand.vmem [shape: f32[8,1], index: 2, kind: input, shape index: {}]   ;;  %s2618_s3 = inlined_call_operand.vmem [shape: f32[4,8], index: 3, kind: input, shape index: {}]   ;;  %s2619_s4 = inlined_call_operand.vmem [shape: f32[4,1], index: 4, kind: input, shape index: {}]   ;;  %s2620_s5 = inlined_call_operand.vmem [shape: f32[16,8], index: 5, kind: input, shape index: {}]   ;;  %s2621_s6 = inlined_call_operand.vmem [shape: f32[16,1], index: 6, kind: input, shape index: {}]   ;;  %s2622_s7 = inlined_call_operand.vmem [shape: f32[32,16], index: 7, kind: input, shape index: {}]   ;;  %s2623_s8 = inlined_call_operand.vmem [shape: f32[32,1], index: 8, kind: input, shape index: {}]   ;;  %s2624_s9 = inlined_call_operand.vmem [shape: f32[4,32], index: 9, kind: input, shape index: {}]   ;;  %s2625_s10 = inlined_call_operand.vmem [shape: f32[4,16], index: 10, kind: input, shape index: {}]   ;;  %s2626_s11 = inlined_call_operand.vmem [shape: f32[4,8], index: 11, kind: input, shape index: {}]   ;;  %s2627_s12 = inlined_call_operand.vmem [shape: f32[4,1], index: 12, kind: input, shape index: {}]   ;;  %s2628_s13 = inlined_call_operand.vmem [shape: f32[256,64], index: 13, kind: input, shape index: {}]   ;;  %s2629_s14 = inlined_call_operand.vmem [shape: f32[64,16], index: 14, kind: input, shape index: {}]   ;;  %s2630_s15 = inlined_call_operand.vmem [shape: f32[64,256], index: 15, kind: input, shape index: {}]   ;;  %s2631_s16 = inlined_call_operand.vmem [shape: f32[16,256], index: 16, kind: input, shape index: {}]   ;;  %s2632_s17 = inlined_call_operand.vmem [shape: f32[2,4,256], index: 17, kind: output, shape index: {0}]   ;;  %s2633_s18 = inlined_call_operand.vmem [shape: f32[2,4,256], index: 18, kind: output, shape index: {1}]  }
   0x1   :  { %2634 = sst [smem:[#allocation2_spill]] %s2615_s0  ;;  %s2273_s29 = smov 0  }
   0x2   :  { %2635 = sst [smem:[#allocation3_spill]] %s2616_s1 }
   0x3   :  { %2636 = sst [smem:[#allocation4_spill]] %s2617_s2 }
   0x4 LB: > { %s41_s30 = sadd.s32 1, %s2165_s28  ;;  %p1905_p0 = scmp.ge.s32.totalorder %s2169_s29, 1  ;;  %s2169_s29 = sphi %s2273_s29, %s29_s29   ;;  %s2165_s28 = sphi %s2271_s28, %s2641_s28   ;;  %s2161_s27 = sphi %s2269_s27, %s2640_s27  }
   0x5   : > { %p43_p1 = scmp.ge.s32.totalorder %s41_s30, 2  ;;  %p538_p2 = scmp.lt.s32.totalorder %s2169_s29, 3 }
   0x7   : > { %s2643_s30 = smov (%p43_p1, %s41_s30), 0  ;;  %p539_p3 = pnand %p1905_p0, %p538_p2 }
   0x8   : > { %p610_p4 = scmp.lt.s32.totalorder (!%p539_p3), %s2161_s27, 1  ;;  %v2171_v0 = vmov (!%p539_p3), 0.0   ;;  %v2172_v1 = vmov (!%p539_p3), 0   ;;  %s2637_s1 = sld [smem:[#allocation4_spill]] (!%p539_p3)  ;;  %v812_v3 = vld [vmem:[%s2619_s4] sm:$0xf] (!%p539_p3)  ;;  %v820_v59 = vlaneseq (!%p539_p3) }
   0x9   : > { %542 = sbr.rel (%p539_p3) target bundleno = 2012 (0x7dc), region = 88  ;;  %722 = vmatprep.mubr.f32.mxu0 (!%p539_p3), %v2171_v0  ;;  %2144 = vset.pattern.permute.xlu0 (!%p539_p3), %v2172_v1  ;;  %s2638_s24 = sld [smem:[#allocation2_spill]] (!%p539_p3)  ;;  %vm653_vm0 = vcmask (!%p539_p3), 1043456   ;;  %v1199_v6 = vld [vmem:[%s2623_s8] sm:$0xff] (!%p539_p3)  ;;  %vm649_vm1 = vcmask (!%p539_p3), 31744   ;;  %v1201_v8 = vld [vmem:[%s2623_s8 + $0x10] sm:$0xff] (!%p539_p3) }
   0xa   : > { %800 = vmatprep.mubr.f32.mxu1 (!%p539_p3), %v2171_v0  ;;  %2145 = vset.pattern.permute.xlu1 (!%p539_p3), %v2172_v1  ;;  %v1751_v9 = vld [vmem:[%s2627_s12] sm:$0xf] (!%p539_p3)  ;;  %vm732_vm2 = vcmask (!%p539_p3), 64512   ;;  %v923_v19 = vld [vmem:[%s2628_s13 + $0x88] sm:$0xff] (!%p539_p3)  ;;  %v924_v23 = vld [vmem:[%s2628_s13 + $0x90] sm:$0xff] (!%p539_p3)  ;;  %v821_v61 = vshrl.u32 (!%p539_p3), %v820_v59, 7 }
   0xb   : > { %v731_v17 = vld [vmem:[%s2618_s3] sm:$0xf] (!%p539_p3)  ;;  %v907_v22 = vld [vmem:[%s2628_s13 + $0x8] sm:$0xff] (!%p539_p3)  ;;  %v925_v24 = vld [vmem:[%s2628_s13 + $0x98] sm:$0xff] (!%p539_p3)  ;;  %v2173_v57 = vmov (!%p539_p3), 839922192  }
   0xc   : > { %v922_v18 = vld [vmem:[%s2628_s13 + $0x80] sm:$0xff] (!%p539_p3)  ;;  %v2033_v26 = vpack.c.bf16 (!%p539_p3), %v925_v24, %v924_v23  ;;  %v908_v27 = vld [vmem:[%s2628_s13 + $0x10] sm:$0xff] (!%p539_p3)  ;;  %v909_v28 = vld [vmem:[%s2628_s13 + $0x18] sm:$0xff] (!%p539_p3)  ;;  %v818_v58 = vunpack.c.l.s4 (!%p539_p3), %v2173_v57  ;;  %vm1113_vm3 = vcmask (!%p539_p3), 523264   ;;  %vm1223_vm4 = vcmask (!%p539_p3), 130048  }
   0xd   : > { %v906_v20 = vld [vmem:[%s2628_s13] sm:$0xff] (!%p539_p3)  ;;  %v2029_v21 = vpack.c.bf16 (!%p539_p3), %v923_v19, %v922_v18  ;;  %v927_v30 = vld [vmem:[%s2628_s13 + $0xa8] sm:$0xff] (!%p539_p3)  ;;  %v2035_v31 = vpack.c.bf16 (!%p539_p3), %v909_v28, %v908_v27  ;;  %v928_v35 = vld [vmem:[%s2628_s13 + $0xb0] sm:$0xff] (!%p539_p3)  ;;  %vm1599_vm5 = vcmask (!%p539_p3), 261120  }
   0xe   : > { %v641_v2 = vld [vmem:[%s2637_s1] sm:$0xff] (!%p539_p3)  ;;  %v2031_v25 = vpack.c.bf16 (!%p539_p3), %v907_v22, %v906_v20  ;;  %v911_v34 = vld [vmem:[%s2628_s13 + $0x28] sm:$0xff] (!%p539_p3)  ;;  %v929_v36 = vld [vmem:[%s2628_s13 + $0xb8] sm:$0xff] (!%p539_p3)  ;;  %v819_v60 = vunpack.c.0.s8 (!%p539_p3), %v818_v58 }
   0xf   : > { %644 = vperm.xlu0 (!%p539_p3), %2144, %v641_v2   ;;  %v926_v29 = vld [vmem:[%s2628_s13 + $0xa0] sm:$0xff] (!%p539_p3)  ;;  %v2041_v38 = vpack.c.bf16 (!%p539_p3), %v929_v36, %v928_v35  ;;  %v912_v39 = vld [vmem:[%s2628_s13 + $0x30] sm:$0xff] (!%p539_p3)  ;;  %v913_v40 = vld [vmem:[%s2628_s13 + $0x38] sm:$0xff] (!%p539_p3) }
  0x10   : > { %s2645_s27 = smov (!%p610_p4, %s2161_s27), 1  ;;  %v2037_v32 = vpack.c.bf16 %v927_v30, %v926_v29  ;;  %v910_v33 = vld [vmem:[%s2628_s13 + $0x20] sm:$0xff]  ;;  %v931_v42 = vld [vmem:[%s2628_s13 + $0xc8] sm:$0xff]  ;;  %v2043_v43 = vpack.c.bf16 %v913_v40, %v912_v39  ;;  %v932_v47 = vld [vmem:[%s2628_s13 + $0xd0] sm:$0xff]  ;;  %v822_v62 = vsub.s32 %v819_v60, %v821_v61 }
  0x11   : > { %s2295_s22 = sshll.u32 %s2645_s27, 3  ;;  %s2639_s27 = sld [smem:[#allocation3_spill]]  ;;  %v2039_v37 = vpack.c.bf16 %v911_v34, %v910_v33  ;;  %v930_v41 = vld [vmem:[%s2628_s13 + $0xc0] sm:$0xff]  ;;  %v915_v46 = vld [vmem:[%s2628_s13 + $0x48] sm:$0xff]  ;;  %v933_v48 = vld [vmem:[%s2628_s13 + $0xd8] sm:$0xff] }
  0x12   : > { %s617_s25 = scalar_lea.vmem %s2638_s24, %s2295_s22  ;;  %v2045_v44 = vpack.c.bf16 %v931_v42, %v930_v41  ;;  %v914_v45 = vld [vmem:[%s2628_s13 + $0x40] sm:$0xff]  ;;  %v2049_v50 = vpack.c.bf16 %v933_v48, %v932_v47  ;;  %v916_v51 = vld [vmem:[%s2628_s13 + $0x50] sm:$0xff]  ;;  %v917_v52 = vld [vmem:[%s2628_s13 + $0x58] sm:$0xff]  ;;  %s627_s23 = scalar_lea.vmem %s2632_s17, %s2295_s22 }
  0x13   : > { %v2301_v4 = vld [vmem:[%s617_s25] sm:$0xff]  ;;  %815 = vperm.xlu0 %2144, %v812_v3   ;;  %v2047_v49 = vpack.c.bf16 %v915_v46, %v914_v45  ;;  %v935_v54 = vld [vmem:[%s2628_s13 + $0xe8] sm:$0xff]  ;;  %v2051_v55 = vpack.c.bf16 %v917_v52, %v916_v51  ;;  %s637_s25 = scalar_lea.vmem %s2633_s18, %s2295_s22  ;;  %v1202_v27 = vld [vmem:[%s2623_s8 + $0x18] sm:$0xff] }
  0x14   : > { %v648_v5 = vcombine.high %v2301_v4, %v2301_v4  ;;  %v934_v53 = vld [vmem:[%s2628_s13 + $0xe0] sm:$0xff]  ;;  %v1106_v29 = vld [vmem:[%s2629_s14 + $0x8] sm:$0xff]  ;;  %v1108_v33 = vld [vmem:[%s2629_s14 + $0x18] sm:$0xff] }
  0x15   : > { %v2053_v56 = vpack.c.bf16 %v935_v54, %v934_v53  ;;  %v1008_v24 = vld [vmem:[%s2620_s5] sm:$0xff]  ;;  %v1009_v36 = vld [vmem:[%s2620_s5 + $0x8] sm:$0xff]  ;;  %v1111_v41 = vld [vmem:[%s2629_s14 + $0x30] sm:$0xff] }
  0x16   : > { %1912 = vmatprep.subr.msk.mxu0 %vm653_vm0, %v648_v5  ;;  %v1105_v28 = vld [vmem:[%s2629_s14] sm:$0xff]  ;;  %v1110_v39 = vld [vmem:[%s2629_s14 + $0x28] sm:$0xff]  ;;  %v1112_v42 = vld [vmem:[%s2629_s14 + $0x38] sm:$0xff] }
  0x17   : > { %v2311_v7 = vld [vmem:[%s2639_s27] sm:$0xff]  ;;  %1913 = vmatpush1.msk.msra.mxu0 %vm653_vm0, %v2301_v4  ;;  %1205 = vperm.xlu0 %2144, %v1199_v6   ;;  %v2061_v35 = vpack.c.bf16 %v1106_v29, %v1105_v28  ;;  %v1431_v53 = vld [vmem:[%s2630_s15 + $0x8] sm:$0xff]  ;;  %v1433_v54 = vld [vmem:[%s2630_s15 + $0x18] sm:$0xff] }
  0x18   : > { %1914 = vmatmul.mubr.msk.f32.vlgmr.msra.gmra.mrb[0].mxu0 %vm649_vm1, %v2311_v7  ;;  %v1195_v52 = vld [vmem:[%s2622_s7] sm:$0xff]  ;;  %v2085_v58 = vpack.c.bf16 %v1433_v54, %v1431_v53  ;;  %v1432_v60 = vld [vmem:[%s2630_s15 + $0x10] sm:$0xff]  ;;  %v1435_v61 = vld [vmem:[%s2630_s15 + $0x28] sm:$0xff] }
  0x19   : > { %897 = vmatprep.mubr.f32.mxu0 %v2171_v0  ;;  %v1430_v59 = vld [vmem:[%s2630_s15] sm:$0xff]  ;;  %v1327_v28 = vld [vmem:[%s2631_s16 + $0x10] sm:$0xff] }
  0x1b   : > { %1215 = vperm.xlu0 %2144, %v1201_v8  }
  0x1f   : > { %1754 = vperm.xlu0 %2144, %v1751_v9  }
  0x8e   : > { %v2325_v10 = vpop.permute.xlu0 %644 }
  0x92   : > { %v816_v3 = vpop.permute.xlu0 %815 }
  0x93   : > { %v823_v5 = vrot.slane %v816_v3, %v822_v62  ;;  %v1437_v62 = vld [vmem:[%s2630_s15 + $0x38] sm:$0xff] }
  0x94   : > { %v2089_v3 = vpack.c.bf16 %v1437_v62, %v1435_v61 }
  0xeb   : > { %v724_v11 = vpop.f32.mrb[0].mxu0 }
  0xec   : > { %v725_v12 = vadd.f32 %v724_v11, %v2325_v10  ;;  %v726_v13 = vpop.f32.mrb[1].mxu0  ;;  %v918_v11 = vld [vmem:[%s2628_s13 + $0x60] sm:$0xff] }
  0xed   : > { %v727_v14 = vadd.f32 %v726_v13, %v2325_v10  ;;  %v936_v13 = vld [vmem:[%s2628_s13 + $0xf0] sm:$0xff] }
  0xee   : > { %v729_v16 = vmax.f32 %v725_v12, 0.0 }
  0xef   : > { %v730_v15 = vmax.f32 %v727_v14, 0.0  ;;  %v937_v14 = vld [vmem:[%s2628_s13 + $0xf8] sm:$0xff] }
  0xf1   : > { %736 = vmatprep.subr.mxu1 %v730_v15  ;;  %v2057_v15 = vpack.c.bf16 %v937_v14, %v936_v13  ;;  %v1438_v13 = vld [vmem:[%s2630_s15 + $0x40] sm:$0xff]  ;;  %v1440_v14 = vld [vmem:[%s2630_s15 + $0x50] sm:$0xff] }
  0xf2   : > { %737 = vmatpush1.msra.mxu1 %v729_v16  ;;  %v921_v16 = vld [vmem:[%s2628_s13 + $0x78] sm:$0xff] }
  0xf3   : > { %1915 = vmatmul.mubr.msk.f32.vlgmr.msra.gmra.mrb[0].mxu1 %vm732_vm2, %v731_v17  ;;  %2030 = vmatprep.subr.bf16.mxu1 %v2029_v21 }
  0xf4   : > { %2032 = vmatpush3.bf16.msra.mxu1 %v2031_v25  ;;  %v1011_v25 = vld [vmem:[%s2621_s6 + $0x8] sm:$0xff] }
  0xf5   : > { %2034 = vmatprep.subr.bf16.mxu1 %v2033_v26  ;;  %v1200_v26 = vld [vmem:[%s2623_s8 + $0x8] sm:$0xff] }
  0xf8   : > { %2036 = vmatpush3.bf16.msra.mxu1 %v2035_v31 }
  0xf9   : > { %2038 = vmatprep.subr.bf16.mxu1 %v2037_v32  ;;  %v1107_v32 = vld [vmem:[%s2629_s14 + $0x10] sm:$0xff] }
  0xfc   : > { %2040 = vmatpush3.bf16.msra.mxu1 %v2039_v37  ;;  %v2065_v37 = vpack.c.bf16 %v1108_v33, %v1107_v32 }
  0xfd   : > { %2042 = vmatprep.subr.bf16.mxu1 %v2041_v38  ;;  %v1109_v38 = vld [vmem:[%s2629_s14 + $0x20] sm:$0xff] }
  0xfe   : > { %v2069_v40 = vpack.c.bf16 %v1110_v39, %v1109_v38 }
 0x100   : > { %2044 = vmatpush3.bf16.msra.mxu1 %v2043_v43  ;;  %v2073_v43 = vpack.c.bf16 %v1112_v42, %v1111_v41 }
 0x101   : > { %2046 = vmatprep.subr.bf16.mxu1 %v2045_v44 }
 0x104   : > { %2048 = vmatpush3.bf16.msra.mxu1 %v2047_v49 }
 0x105   : > { %2050 = vmatprep.subr.bf16.mxu1 %v2049_v50 }
 0x108   : > { %2052 = vmatpush3.bf16.msra.mxu1 %v2051_v55 }
 0x109   : > { %2054 = vmatprep.subr.bf16.mxu1 %v2053_v56 }
 0x1c6   : > { %v802_v63 = vpop.f32.mrb[0].mxu1 }
 0x1c7   : > { %v804_v1 = vpop.f32.mrb[1].mxu1 }
 0x1c8   : > { %v809_v2 = vcombine.low %v802_v63, %v804_v1  ;;  %v1196_v63 = vld [vmem:[%s2622_s7 + $0x8] sm:$0xff]  ;;  %v2087_v1 = vpack.c.bf16 %v1432_v60, %v1430_v59 }
 0x1ca   : > { %v811_v6 = vadd.f32 %v809_v2, %v2301_v4  ;;  %v919_v4 = vld [vmem:[%s2628_s13 + $0x68] sm:$0xff]  ;;  %v1197_v2 = vld [vmem:[%s2622_s7 + $0x10] sm:$0xff] }
 0x1cb   : > { %v2055_v12 = vpack.c.bf16 %v919_v4, %v918_v11  ;;  %v1198_v11 = vld [vmem:[%s2622_s7 + $0x18] sm:$0xff] }
 0x1cc   : > { %v825_v8 = vadd.f32 %v823_v5, %v811_v6  ;;  %v1434_v5 = vld [vmem:[%s2630_s15 + $0x20] sm:$0xff]  ;;  %v1436_v6 = vld [vmem:[%s2630_s15 + $0x30] sm:$0xff] }
 0x1cd   : > { %2056 = vmatpush3.bf16.msra.mxu1 %v2055_v12  ;;  %v2091_v4 = vpack.c.bf16 %v1436_v6, %v1434_v5 }
 0x1ce   : > { %826 = vst [vmem:[%s637_s25] sm:$0xff] %v825_v8  ;;  %v828_v9 = vcombine.high %v825_v8, %v825_v8  ;;  %2058 = vmatprep.subr.bf16.mxu1 %v2057_v15  ;;  %v1443_v15 = vld [vmem:[%s2630_s15 + $0x68] sm:$0xff] }
 0x1d0   : > { %1916 = vmatprep.subr.msk.mxu0 %vm653_vm0, %v828_v9  ;;  %v1441_v9 = vld [vmem:[%s2630_s15 + $0x58] sm:$0xff] }
 0x1d1   : > { %1917 = vmatpush1.msk.msra.mxu0 %vm653_vm0, %v825_v8  ;;  %v1439_v8 = vld [vmem:[%s2630_s15 + $0x48] sm:$0xff] }
 0x1d2   : > { %1918 = vmatmul.mubr.msk.f32.vlgmr.msra.gmra.mrb[2].mxu0 %vm649_vm1, %v2311_v7  ;;  %v920_v7 = vld [vmem:[%s2628_s13 + $0x70] sm:$0xff]  ;;  %v2093_v12 = vpack.c.bf16 %v1441_v9, %v1439_v8 }
 0x1d3   : > { %v2059_v17 = vpack.c.bf16 %v921_v16, %v920_v7  ;;  %1997 = vmatprep.mubr.msk.f32.mxu0 %vm732_vm2, %v1008_v24  ;;  %v1445_v7 = vld [vmem:[%s2630_s15 + $0x78] sm:$0xff]  ;;  %v2095_v16 = vpack.c.bf16 %v1440_v14, %v1438_v13 }
 0x1d5   : > { %2060 = vmatpush3.bf16.msra.mxu1 %v2059_v17  ;;  %v2097_v17 = vpack.c.bf16 %v1445_v7, %v1443_v15 }
 0x2a5   : > { %v899_v18 = vpop.f32.mrb[2].mxu0 }
 0x2a6   : > { %v2439_v19 = vadd.f32 %v899_v18, %v2325_v10  ;;  %v901_v20 = vpop.f32.mrb[3].mxu0  ;;  %v1442_v18 = vld [vmem:[%s2630_s15 + $0x60] sm:$0xff] }
 0x2a7   : > { %v2442_v21 = vadd.f32 %v901_v20, %v2325_v10  ;;  %v1010_v10 = vld [vmem:[%s2621_s6] sm:$0xff]  ;;  %v1444_v20 = vld [vmem:[%s2630_s15 + $0x70] sm:$0xff] }
 0x2a8   : > { %v904_v23 = vmax.f32 %v2439_v19, 0.0  ;;  %1014 = vperm.xlu1 %2145, %v1010_v10   ;;  %v2099_v24 = vpack.c.bf16 %v1444_v20, %v1442_v18  ;;  %v1326_v10 = vld [vmem:[%s2631_s16 + $0x8] sm:$0xff] }
 0x2a9   : > { %v905_v22 = vmax.f32 %v2442_v21, 0.0 }
 0x2ab   : > { %1002 = vmatprep.mubr.f32.mxu1 %v905_v22 }
 0x2ac   : > { %1003 = vmatmul.mubr.f32.vlgmr.msra.gmra.mrb[2].mxu1 %v904_v23  ;;  %1019 = vperm.xlu1 %2145, %v1011_v25   ;;  %v1328_v25 = vld [vmem:[%s2631_s16 + $0x18] sm:$0xff] }
 0x2ad   : > { %2023 = vmatprep.mubr.msk.f32.mxu1 %vm1223_vm4, %v1195_v52  ;;  %v1524_v52 = vld [vmem:[%s2625_s10] sm:$0xf] }
 0x2b0   : > { %1210 = vperm.xlu1 %2145, %v1200_v26   ;;  %v2081_v26 = vpack.c.bf16 %v1328_v25, %v1326_v10 }
 0x2b4   : > { %1220 = vperm.xlu1 %2145, %v1202_v27   ;;  %v1325_v27 = vld [vmem:[%s2631_s16] sm:$0xff] }
 0x2b5   : > { %v2083_v29 = vpack.c.bf16 %v1327_v28, %v1325_v27 }
 0x327   : > { %v1015_v44 = vpop.permute.xlu1 %1014 }
 0x32b   : > { %v1020_v45 = vpop.permute.xlu1 %1019 }
 0x37f   : > { %v1973_v30 = vpop.f32.mrb[2].mxu1 }
 0x380   : > { %v1974_v31 = vpop.f32.mrb[3].mxu1 }
 0x381   : > { %v1975_v34 = vadd.f32 %v1974_v31, %v1973_v30  ;;  %v1206_v31 = vpop.permute.xlu0 %1205 }
 0x383   : > { %1995 = vmatprep.subr.mxu0 %v1975_v34 }
 0x384   : > { %1996 = vmatpush3.msra.mxu0 %v1975_v34  ;;  %v1211_v34 = vpop.permute.xlu1 %1210 }
 0x385   : > { %1998 = vmatmul.mubr.msk.f32.vlgmr.msra.gmra.mrb[4].mxu0 %vm732_vm2, %v1009_v36  ;;  %2062 = vmatprep.subr.bf16.mxu0 %v2061_v35  ;;  %v1216_v39 = vpop.permute.xlu0 %1215 }
 0x386   : > { %2064 = vmatpush3.bf16.msra.mxu0 %v2061_v35 }
 0x387   : > { %2066 = vmatprep.subr.bf16.mxu0 %v2065_v37 }
 0x388   : > { %v1221_v42 = vpop.permute.xlu1 %1220 }
 0x389   : > { %v1755_v5 = vpop.permute.xlu0 %1754 }
 0x38a   : > { %2068 = vmatpush3.bf16.msra.mxu0 %v2065_v37 }
 0x38b   : > { %2070 = vmatprep.subr.bf16.mxu0 %v2069_v40 }
 0x38e   : > { %2072 = vmatpush3.bf16.msra.mxu0 %v2069_v40 }
 0x38f   : > { %2074 = vmatprep.subr.bf16.mxu0 %v2073_v43 }
 0x392   : > { %2076 = vmatpush3.bf16.msra.mxu0 %v2073_v43 }
 0x393   : > { %2082 = vmatprep.subr.bf16.mxu0 %v2081_v26 }
 0x458   : > { %v1999_v46 = vpop.f32.mrb[4].mxu0 }
 0x459   : > { %v1100_v47 = vadd.f32 %v1999_v46, %v1020_v45  ;;  %v1094_v48 = vpop.f32.mrb[5].mxu0 }
 0x45a   : > { %v1095_v49 = vadd.f32 %v1094_v48, %v1015_v44 }
 0x45b   : > { %v1104_v51 = vmax.f32 %v1100_v47, 0.0 }
 0x45c   : > { %v1103_v50 = vmax.f32 %v1095_v49, 0.0 }
 0x45e   : > { %2016 = vmatprep.mubr.msk.f32.mxu0 %vm1113_vm3, %v1103_v50 }
 0x45f   : > { %2017 = vmatmul.mubr.msk.f32.vlgmr.msra.gmra.mrb[6].mxu0 %vm1113_vm3, %v1104_v51 }
 0x460   : > { %1405 = vmatprep.mubr.f32.mxu0 %v2171_v0  ;;  %2084 = vmatpush1.bf16.msra.mxu0 %v2083_v29 }
 0x532   : > { %v2018_v55 = vpop.f32.mrb[6].mxu0 }
 0x533   : > { %v1186_v56 = vpop.f32.mrb[7].mxu0 }
 0x534   : > { %v2077_v57 = vpack.c.bf16 %v2018_v55, %v1186_v56 }
 0x536   : > { %2078 = vmatprep.subr.bf16.mxu1 %v2077_v57 }
 0x537   : > { %2080 = vmatpush3.bf16.msra.mxu1 %v2077_v57 }
 0x538   : > { %2086 = vmatprep.subr.bf16.mxu1 %v2085_v58 }
 0x53a   : > { %2024 = vmatmul.mubr.msk.f32.vlgmr.msra.gmra.mrb[4].mxu1 %vm1223_vm4, %v1196_v63 }
 0x53b   : > { %2088 = vmatpush1.bf16.msra.mxu1 %v2087_v1  ;;  %2026 = vmatprep.mubr.msk.f32.mxu1 %vm1223_vm4, %v1197_v2  ;;  %v1523_v2 = vld [vmem:[%s2624_s9] sm:$0xf] }
 0x53c   : > { %2090 = vmatprep.subr.bf16.mxu1 %v2089_v3  ;;  %v1674_v3 = vld [vmem:[%s2626_s11] sm:$0xf] }
 0x53e   : > { %2027 = vmatmul.mubr.msk.f32.gmra.mrb[6].mxu1 %vm1223_vm4, %v1198_v11 }
 0x53f   : > { %2092 = vmatpush1.bf16.msra.mxu1 %v2091_v4  ;;  %1510 = vmatprep.mubr.f32.mxu1 %v2171_v0 }
 0x540   : > { %2094 = vmatprep.subr.bf16.mxu1 %v2093_v12 }
 0x543   : > { %2096 = vmatpush1.bf16.msra.mxu1 %v2095_v16 }
 0x544   : > { %2098 = vmatprep.subr.bf16.mxu1 %v2097_v17 }
 0x547   : > { %2100 = vmatpush1.bf16.msra.mxu1 %v2099_v24 }
 0x54a   : > { %1931 = vmatmul.mubr.msk.f32.vlgmr.msra.gmra.mrb[8].mxu1 %vm1113_vm3, %v1103_v50 }
 0x54b   : > { %1516 = vmatprep.mubr.f32.mxu1 %v2171_v0 }
 0x54e   : > { %1932 = vmatmul.mubr.msk.f32.gmra.mrb[10].mxu1 %vm1113_vm3, %v1104_v51 }
 0x60d   : > { %v2025_v30 = vpop.f32.mrb[4].mxu1 }
 0x60e   : > { %v1302_v32 = vpop.f32.mrb[5].mxu1  ;;  %v1308_v35 = vadd.f32 %v2025_v30, %v1211_v34 }
 0x60f   : > { %v1303_v33 = vadd.f32 %v1302_v32, %v1206_v31 }
 0x610   : > { %v1322_v40 = vmax.f32 %v1308_v35, 0.0 }
 0x611   : > { %v1321_v36 = vmax.f32 %v1303_v33, 0.0  ;;  %v2028_v37 = vpop.f32.mrb[6].mxu1 }
 0x612   : > { %v1312_v38 = vpop.f32.mrb[7].mxu1  ;;  %v1318_v43 = vadd.f32 %v2028_v37, %v1221_v42 }
 0x613   : > { %1927 = vmatmul.mubr.msk.f32.vlgmr.msra.gmra.mrb[8].mxu0 %vm1223_vm4, %v1321_v36  ;;  %v1313_v41 = vadd.f32 %v1312_v38, %v1216_v39 }
 0x614   : > { %1411 = vmatprep.mubr.f32.mxu0 %v2171_v0  ;;  %v1324_v45 = vmax.f32 %v1318_v43, 0.0 }
 0x615   : > { %v1323_v44 = vmax.f32 %v1313_v41, 0.0 }
 0x617   : > { %1928 = vmatmul.mubr.msk.f32.gmra.mrb[10].mxu0 %vm1223_vm4, %v1322_v40 }
 0x618   : > { %1417 = vmatprep.mubr.f32.mxu0 %v2171_v0 }
 0x61b   : > { %1929 = vmatmul.mubr.msk.f32.gmra.mrb[12].mxu0 %vm1223_vm4, %v1323_v44 }
 0x61c   : > { %1423 = vmatprep.mubr.f32.mxu0 %v2171_v0 }
 0x61d   : > { %v1512_v46 = vpop.f32.mrb[8].mxu1 }
 0x61e   : > { %v1514_v47 = vpop.f32.mrb[9].mxu1 }
 0x61f   : > { %1930 = vmatmul.mubr.msk.f32.gmra.mrb[14].mxu0 %vm1223_vm4, %v1324_v45 }
 0x620   : > { %1592 = vmatprep.mubr.f32.mxu0 %v2171_v0 }
 0x621   : > { %v1518_v48 = vpop.f32.mrb[10].mxu1 }
 0x622   : > { %v2103_v49 = vpack.c.bf16 %v1518_v48, %v1512_v46  ;;  %v1520_v50 = vpop.f32.mrb[11].mxu1 }
 0x623   : > { %v2101_v51 = vpack.c.bf16 %v1520_v50, %v1514_v47 }
 0x625   : > { %2102 = vmatprep.subr.bf16.mxu0 %v2101_v51 }
 0x626   : > { %2104 = vmatpush1.bf16.msra.mxu0 %v2103_v49 }
 0x629   : > { %1933 = vmatmul.mubr.msk.f32.vlgmr.msra.gmra.mrb[16].mxu0 %vm1223_vm4, %v1524_v52 }
 0x62a   : > { %1667 = vmatprep.mubr.f32.mxu0 %v2171_v0 }
 0x6e6   : > { %v1407_v53 = vpop.f32.mrb[8].mxu0 }
 0x6e7   : > { %v1409_v54 = vpop.f32.mrb[9].mxu0 }
 0x6ea   : > { %v1413_v55 = vpop.f32.mrb[10].mxu0 }
 0x6eb   : > { %v2107_v56 = vpack.c.bf16 %v1413_v55, %v1407_v53  ;;  %v1415_v57 = vpop.f32.mrb[11].mxu0 }
 0x6ec   : > { %v2105_v58 = vpack.c.bf16 %v1415_v57, %v1409_v54 }
 0x6ee   : > { %v1419_v59 = vpop.f32.mrb[12].mxu0  ;;  %2106 = vmatprep.subr.bf16.mxu0 %v2105_v58 }
 0x6ef   : > { %v1421_v60 = vpop.f32.mrb[13].mxu0  ;;  %2108 = vmatpush1.bf16.msra.mxu0 %v2107_v56 }
 0x6f2   : > { %v1425_v61 = vpop.f32.mrb[14].mxu0 }
 0x6f3   : > { %v2111_v62 = vpack.c.bf16 %v1425_v61, %v1419_v59  ;;  %v1427_v63 = vpop.f32.mrb[15].mxu0 }
 0x6f4   : > { %v2109_v1 = vpack.c.bf16 %v1427_v63, %v1421_v60 }
 0x6f6   : > { %2110 = vmatprep.subr.bf16.mxu0 %v2109_v1 }
 0x6f7   : > { %2112 = vmatpush1.bf16.msra.mxu0 %v2111_v62 }
 0x6f8   : > { %1678 = vmatprep.subr.mxu0 %v905_v22 }
 0x6fa   : > { %1934 = vmatmul.mubr.msk.f32.vlgmr.msra.gmra.mrb[16].mxu0 %vm1599_vm5, %v1523_v2 }
 0x6fb   : > { %1679 = vmatpush1.msra.mxu0 %v904_v23  ;;  %1742 = vmatprep.mubr.f32.mxu0 %v2171_v0 }
 0x702   : > { %1935 = vmatmul.mubr.msk.f32.vlgmr.msra.gmra.mrb[16].mxu0 %vm732_vm2, %v1674_v3 }
 0x7d5   : > { %v1744_v6 = vpop.f32.mrb[16].mxu0 }
 0x7d6   : > { %v1757_v8 = vadd.f32 %v1755_v5, %v1744_v6  ;;  %v1746_v9 = vpop.f32.mrb[17].mxu0 }
 0x7d7   : > { %v1758_v11 = vadd.f32 %v1755_v5, %v1746_v9 }
 0x7d9   : > { %v1761_v21 = vcombine.low %v1757_v8, %v1758_v11 }
 0x7db   : > { %1763 = vst [vmem:[%s627_s23] sm:$0xff] %v1761_v21 }
 0x7dc PF: > { %s29_s29 = sadd.s32 1, %s2169_s29   ;;  %s2640_s27 = smov %s2165_s28 }
 0x7dd   : > { %p26_p5 = scmp.ge.s32.totalorder %s29_s29, 4   ;;  %s2641_s28 = smov %s2643_s30 }
 0x7df   :  { %28 = sbr.rel (!%p26_p5) target bundleno = 4 (0x4), region = 130 }

</bundles_post_ra>
